<compile_context>
chip_gen: v7x
topology: tpu7x:2x2x1
jax: 0.10.0
libtpu: 0.0.40
codegen_flags: <defaults>
</compile_context>

<pallas_src>
import jax
import jax.numpy as jnp
from jax.experimental import pallas as pl
from jax.experimental.pallas import tpu as pltpu

BN_EPS = 1e-5
LEAKY_SLOPE = 0.1


def _round_up(x, m):
    return (x + m - 1) // m * m


# ---------------- Pass 1: conv GEMM tiles + per-channel sum / sum-of-squares ----------------
def conv_stats_kernel(w_ref, a_ref, y_ref, sum_ref, sq_ref):
    # w_ref:   (Cout_p, Kdim_p)  bf16  conv weight (constant block across the grid)
    # a_ref:   (Kdim_p, TILE_M)  bf16  im2col patches, transposed, one M-tile per step
    # y_ref:   (Cout_p, TILE_M)  f32   conv output tile (lane-dense stores)
    # sum_ref: (Cout_p, 1)       f32   per-channel running sum   (accumulator across grid)
    # sq_ref:  (Cout_p, 1)       f32   per-channel running sumsq (accumulator across grid)
    acc = jnp.dot(w_ref[...], a_ref[...], preferred_element_type=jnp.float32)
    y_ref[...] = acc

    @pl.when(pl.program_id(0) == 0)
    def _():
        sum_ref[...] = jnp.zeros_like(sum_ref)
        sq_ref[...] = jnp.zeros_like(sq_ref)

    sum_ref[...] += jnp.sum(acc, axis=1, keepdims=True)
    sq_ref[...] += jnp.sum(acc * acc, axis=1, keepdims=True)


# ---------------- Pass 2: fused BN affine + LeakyReLU ----------------
def bn_act_kernel(y_ref, scale_ref, bias_ref, o_ref):
    y = y_ref[...] * scale_ref[...] + bias_ref[...]
    o_ref[...] = jnp.where(y > 0, y, LEAKY_SLOPE * y).astype(o_ref.dtype)


def cnn_block(x, weight, gamma, beta, *, stride=1, padding=1, tile_m=256):
    """x: (N, Cin, H, W) NCHW.  weight: (Cout, Cin, K, K).  Returns (N, Cout, OH, OW) f32."""
    N, Cin, H, W = x.shape
    Cout, _, K, _ = weight.shape
    OH = (H + 2 * padding - K) // stride + 1
    OW = (W + 2 * padding - K) // stride + 1
    M = N * OH * OW
    Kdim = Cin * K * K

    tile_m = _round_up(tile_m, 128)          # lane-dense output tiles
    M_pad = _round_up(max(M, tile_m), tile_m)
    Kdim_pad = _round_up(Kdim, 128)          # unmasked, MXU-aligned contraction
    Cout_pad = _round_up(Cout, 8)            # sublane multiple
    grid_m = M_pad // tile_m

    # --- glue: im2col, built directly in the transposed (Kdim, M) layout ---
    # TODO(synk): for production shapes, gather patches inside the kernel (manual DMA from the
    # padded input / K*K shifted matmuls) instead of materializing the K*K-expanded im2col in XLA.
    xp = jnp.pad(x, ((0, 0), (0, 0), (padding, padding), (padding, padding)))
    cols = []
    for ki in range(K):
        for kj in range(K):
            cols.append(xp[:, :, ki:ki + stride * OH:stride, kj:kj + stride * OW:stride])
    patches = jnp.stack(cols, axis=0)            # (K*K, N, Cin, OH, OW)
    patches = patches.transpose(2, 0, 1, 3, 4)   # (Cin, K*K, N, OH, OW)
    aT = patches.reshape(Kdim, M)                # row = ci*K*K + ki*K + kj, col = n*OH*OW + oh*OW + ow
    aT = jnp.pad(aT, ((0, Kdim_pad - Kdim), (0, M_pad - M))).astype(jnp.bfloat16)

    w_mat = weight.reshape(Cout, Kdim)
    w_mat = jnp.pad(w_mat, ((0, Cout_pad - Cout), (0, Kdim_pad - Kdim))).astype(jnp.bfloat16)

    # --- Pass 1: conv GEMM + cross-tile BN statistics (grid axis is a reduction -> "arbitrary") ---
    cost1 = pl.CostEstimate(
        flops=2 * M_pad * Kdim_pad * Cout_pad,
        transcendentals=0,
        bytes_accessed=aT.size * 2 + w_mat.size * 2 + Cout_pad * M_pad * 4 + 2 * Cout_pad * 4,
    )
    conv_out, ch_sum, ch_sq = pl.pallas_call(
        conv_stats_kernel,
        out_shape=(
            jax.ShapeDtypeStruct((Cout_pad, M_pad), jnp.float32),
            jax.ShapeDtypeStruct((Cout_pad, 1), jnp.float32),
            jax.ShapeDtypeStruct((Cout_pad, 1), jnp.float32),
        ),
        grid=(grid_m,),
        in_specs=[
            pl.BlockSpec((Cout_pad, Kdim_pad), lambda i: (0, 0)),
            pl.BlockSpec((Kdim_pad, tile_m), lambda i: (0, i)),
        ],
        out_specs=(
            pl.BlockSpec((Cout_pad, tile_m), lambda i: (0, i)),
            pl.BlockSpec((Cout_pad, 1), lambda i: (0, 0)),
            pl.BlockSpec((Cout_pad, 1), lambda i: (0, 0)),
        ),
        compiler_params=pltpu.CompilerParams(dimension_semantics=("arbitrary",)),
        cost_estimate=cost1,
    )(w_mat, aT)

    # --- tiny O(Cout) glue: fold batch stats + gamma/beta into per-channel scale/bias ---
    # Zero-padded M columns produce exactly-zero conv output, so they add 0 to sum/sumsq;
    # dividing by the true M keeps the statistics exact.
    gamma_p = jnp.pad(gamma.astype(jnp.float32), (0, Cout_pad - Cout)).reshape(Cout_pad, 1)
    beta_p = jnp.pad(beta.astype(jnp.float32), (0, Cout_pad - Cout)).reshape(Cout_pad, 1)
    mean = ch_sum / M
    var = jnp.maximum(ch_sq / M - mean * mean, 0.0)   # biased variance (BN training mode), f32
    scale = gamma_p * jax.lax.rsqrt(var + BN_EPS)
    bias = beta_p - mean * scale

    # --- Pass 2: normalize + affine + LeakyReLU; M axis fully parallel ---
    cost2 = pl.CostEstimate(
        flops=4 * Cout_pad * M_pad,
        transcendentals=0,
        bytes_accessed=2 * Cout_pad * M_pad * 4 + 2 * Cout_pad * 4,
    )
    out_t = pl.pallas_call(
        bn_act_kernel,
        out_shape=jax.ShapeDtypeStruct((Cout_pad, M_pad), jnp.float32),
        grid=(grid_m,),
        in_specs=[
            pl.BlockSpec((Cout_pad, tile_m), lambda i: (0, i)),
            pl.BlockSpec((Cout_pad, 1), lambda i: (0, 0)),
            pl.BlockSpec((Cout_pad, 1), lambda i: (0, 0)),
        ],
        out_specs=pl.BlockSpec((Cout_pad, tile_m), lambda i: (0, i)),
        compiler_params=pltpu.CompilerParams(dimension_semantics=("parallel",)),
        cost_estimate=cost2,
    )(conv_out, scale, bias)

    # back to NCHW
    return out_t[:Cout, :M].reshape(Cout, N, OH, OW).transpose(1, 0, 2, 3)


def reference(x, weight, gamma, beta, *, stride=1, padding=1):
    """Pure-JAX reference mirroring PyTorch CNNBlock forward (BN training mode)."""
    y = jax.lax.conv_general_dilated(
        x, weight, window_strides=(stride, stride),
        padding=[(padding, padding), (padding, padding)],
        dimension_numbers=("NCHW", "OIHW", "NCHW"),
    )
    mean = jnp.mean(y, axis=(0, 2, 3), keepdims=True)
    var = jnp.mean((y - mean) ** 2, axis=(0, 2, 3), keepdims=True)
    yhat = (y - mean) / jnp.sqrt(var + BN_EPS)
    yhat = yhat * gamma.reshape(1, -1, 1, 1) + beta.reshape(1, -1, 1, 1)
    return jnp.where(yhat > 0, yhat, LEAKY_SLOPE * yhat)


if __name__ == "__main__":
    key = jax.random.PRNGKey(0)
    k_x, k_w, k_g, k_b = jax.random.split(key, 4)

    # CNNBlock(in_channels=4, out_channels=8, kernel_size=3, stride=1, padding=1)
    N, Cin, H, W = 2, 4, 16, 16
    Cout, K = 8, 3

    x = jax.random.normal(k_x, (N, Cin, H, W), dtype=jnp.float32)
    weight = jax.random.normal(k_w, (Cout, Cin, K, K), dtype=jnp.float32) * 0.1
    gamma = jax.random.uniform(k_g, (Cout,), dtype=jnp.float32, minval=0.5, maxval=1.5)
    beta = jax.random.normal(k_b, (Cout,), dtype=jnp.float32) * 0.1

    # tile_m=256 -> 2 M-tiles for M=512, exercising the cross-tile BN accumulation path.
    out = cnn_block(x, weight, gamma, beta, stride=1, padding=1, tile_m=256)
    out = jax.block_until_ready(out)

    ref = jax.block_until_ready(reference(x, weight, gamma, beta, stride=1, padding=1))
    assert out.shape == (N, Cout, H, W)
    # Tolerance accounts for bf16 MXU inputs (f32 accumulation/epilogue).
    assert jnp.allclose(out, ref, rtol=2e-2, atol=2e-2), "mismatch vs reference"

    print("KERNEL_OK")
</pallas_src>

<mosaic_0001>
module attributes {stable_mosaic.version = 11 : i64} {
  func.func @conv_stats_kernel(%arg0: i32, %arg1: memref<8x128xbf16, #tpu.memory_space<vmem>>, %arg2: memref<128x256xbf16, #tpu.memory_space<vmem>>, %arg3: memref<8x256xf32, #tpu.memory_space<vmem>>, %arg4: memref<8x1xf32, #tpu.memory_space<vmem>>, %arg5: memref<8x1xf32, #tpu.memory_space<vmem>>) attributes {dimension_semantics = [#tpu.dimension_semantics<arbitrary>], iteration_bounds = array<i64: 2>, scalar_prefetch = 0 : i64, scratch_operands = 0 : i64, tpu.core_type = #tpu.core_type<tc>, window_params = [{pipeline_mode = #tpu.pipeline_mode<synchronous>, transform_indices = @transform_0, window_bounds = array<i64: 8, 128>}, {transform_indices = @transform_1, window_bounds = array<i64: 128, 256>}, {transform_indices = @transform_2, window_bounds = array<i64: 8, 256>}, {pipeline_mode = #tpu.pipeline_mode<synchronous>, transform_indices = @transform_3, window_bounds = array<i64: 8, 1>}, {pipeline_mode = #tpu.pipeline_mode<synchronous>, transform_indices = @transform_4, window_bounds = array<i64: 8, 1>}]} {
    %c0 = arith.constant 0 : index
    %c0_0 = arith.constant 0 : index
    %0 = vector.load %arg1[%c0, %c0_0] : memref<8x128xbf16, #tpu.memory_space<vmem>>, vector<8x128xbf16>
    %c0_1 = arith.constant 0 : index
    %c0_2 = arith.constant 0 : index
    %1 = vector.load %arg2[%c0_1, %c0_2] : memref<128x256xbf16, #tpu.memory_space<vmem>>, vector<128x256xbf16>
    %cst = arith.constant dense<0.000000e+00> : vector<8x256xf32>
    %2 = tpu.matmul %0, %1, %cst {dimension_numbers = #tpu.dot_dimension_numbers<[1], [0], [0], [1], [0, 0, 1, 1], [], []>} : vector<8x128xbf16>, vector<128x256xbf16>, vector<8x256xf32> -> vector<8x256xf32>
    %c0_3 = arith.constant 0 : index
    %c0_4 = arith.constant 0 : index
    %3 = vector.load %arg3[%c0_3, %c0_4] : memref<8x256xf32, #tpu.memory_space<vmem>>, vector<8x256xf32>
    tpu.vector_store %arg3[%c0_3, %c0_4], %2 {strides = array<i32>} : memref<8x256xf32, #tpu.memory_space<vmem>>, vector<8x256xf32>,
    %c0_i32 = arith.constant 0 : i32
    %4 = arith.cmpi eq, %arg0, %c0_i32 : i32
    %5 = arith.extui %4 : i1 to i32
    %c0_i32_5 = arith.constant 0 : i32
    %6 = arith.cmpi ne, %5, %c0_i32_5 : i32
    scf.if %6 {
      %cst_16 = arith.constant 0.000000e+00 : f32
      %18 = vector.broadcast %cst_16 : f32 to vector<8x1xf32>
      %c0_17 = arith.constant 0 : index
      %c0_18 = arith.constant 0 : index
      %19 = vector.load %arg4[%c0_17, %c0_18] : memref<8x1xf32, #tpu.memory_space<vmem>>, vector<8x1xf32>
      tpu.vector_store %arg4[%c0_17, %c0_18], %18 {strides = array<i32>} : memref<8x1xf32, #tpu.memory_space<vmem>>, vector<8x1xf32>,
      %cst_19 = arith.constant 0.000000e+00 : f32
      %20 = vector.broadcast %cst_19 : f32 to vector<8x1xf32>
      %c0_20 = arith.constant 0 : index
      %c0_21 = arith.constant 0 : index
      %21 = vector.load %arg5[%c0_20, %c0_21] : memref<8x1xf32, #tpu.memory_space<vmem>>, vector<8x1xf32>
      tpu.vector_store %arg5[%c0_20, %c0_21], %20 {strides = array<i32>} : memref<8x1xf32, #tpu.memory_space<vmem>>, vector<8x1xf32>,
    } else {
    }
    %c0_6 = arith.constant 0 : index
    %c0_7 = arith.constant 0 : index
    %7 = vector.load %arg4[%c0_6, %c0_7] : memref<8x1xf32, #tpu.memory_space<vmem>>, vector<8x1xf32>
    %cst_8 = arith.constant dense<0.000000e+00> : vector<8xf32>
    %8 = vector.multi_reduction <add>, %2, %cst_8 [1] : vector<8x256xf32> to vector<8xf32>
    %9 = vector.shape_cast %8 : vector<8xf32> to vector<8x1xf32>
    %10 = arith.addf %7, %9 : vector<8x1xf32>
    %c0_9 = arith.constant 0 : index
    %c0_10 = arith.constant 0 : index
    %11 = vector.load %arg4[%c0_9, %c0_10] : memref<8x1xf32, #tpu.memory_space<vmem>>, vector<8x1xf32>
    tpu.vector_store %arg4[%c0_9, %c0_10], %10 {strides = array<i32>} : memref<8x1xf32, #tpu.memory_space<vmem>>, vector<8x1xf32>,
    %c0_11 = arith.constant 0 : index
    %c0_12 = arith.constant 0 : index
    %12 = vector.load %arg5[%c0_11, %c0_12] : memref<8x1xf32, #tpu.memory_space<vmem>>, vector<8x1xf32>
    %13 = arith.mulf %2, %2 : vector<8x256xf32>
    %cst_13 = arith.constant dense<0.000000e+00> : vector<8xf32>
    %14 = vector.multi_reduction <add>, %13, %cst_13 [1] : vector<8x256xf32> to vector<8xf32>
    %15 = vector.shape_cast %14 : vector<8xf32> to vector<8x1xf32>
    %16 = arith.addf %12, %15 : vector<8x1xf32>
    %c0_14 = arith.constant 0 : index
    %c0_15 = arith.constant 0 : index
    %17 = vector.load %arg5[%c0_14, %c0_15] : memref<8x1xf32, #tpu.memory_space<vmem>>, vector<8x1xf32>
    tpu.vector_store %arg5[%c0_14, %c0_15], %16 {strides = array<i32>} : memref<8x1xf32, #tpu.memory_space<vmem>>, vector<8x1xf32>,
    return
  }
  func.func @transform_0(%arg0: i32) -> (i32, i32) {
    %c0_i32 = arith.constant 0 : i32
    %c0_i32_0 = arith.constant 0 : i32
    %c0_i32_1 = arith.constant 0 : i32
    return %c0_i32, %c0_i32_0 : i32, i32
  }
  func.func @transform_1(%arg0: i32) -> (i32, i32) {
    %c0_i32 = arith.constant 0 : i32
    %c0_i32_0 = arith.constant 0 : i32
    return %c0_i32, %arg0 : i32, i32
  }
  func.func @transform_2(%arg0: i32) -> (i32, i32) {
    %c0_i32 = arith.constant 0 : i32
    %c0_i32_0 = arith.constant 0 : i32
    return %c0_i32, %arg0 : i32, i32
  }
  func.func @transform_3(%arg0: i32) -> (i32, i32) {
    %c0_i32 = arith.constant 0 : i32
    %c0_i32_0 = arith.constant 0 : i32
    %c0_i32_1 = arith.constant 0 : i32
    return %c0_i32, %c0_i32_0 : i32, i32
  }
  func.func @transform_4(%arg0: i32) -> (i32, i32) {
    %c0_i32 = arith.constant 0 : i32
    %c0_i32_0 = arith.constant 0 : i32
    %c0_i32_1 = arith.constant 0 : i32
    return %c0_i32, %c0_i32_0 : i32, i32
  }
}

</mosaic_0001>

<bundles_post_ra>
// kernel: tpu_custom_call.1
= control target key start
LH: loop header
LB: loop body
LE: loop exit
PB: predicated region body
PF: predicated region fallthrough
CT: control target
= control target key end

     0   :  { %10 = vsyncpa [#allocation3], 0  ;;  %s1012_s0 = inlined_call_operand.hbm [shape: bf16[8,128], index: 0, kind: input, shape index: {}]   ;;  %s1013_s1 = inlined_call_operand.hbm [shape: bf16[128,512], index: 1, kind: input, shape index: {}]   ;;  %s1014_s2 = inlined_call_operand.hbm [shape: f32[8,512], index: 2, kind: output, shape index: {0}]   ;;  %s1015_s3 = inlined_call_operand.vmem [shape: f32[8,1], index: 3, kind: output, shape index: {1}]   ;;  %s1016_s4 = inlined_call_operand.vmem [shape: f32[8,1], index: 4, kind: output, shape index: {2}]  }
   0x1   :  { %11 = vsyncpa [#allocation6], 0 }
   0x2   :  { %13 = vsyncpa [#allocation6 + $0x1], 0 }
   0x3   :  { %14 = vsyncpa [#allocation4], 0 }
   0x4   :  { %16 = vsyncpa [#allocation4 + $0x1], 0  ;;  %s782_s15 = smov 0   ;;  %s784_s16 = smov 0  }
   0x5   :  { %s786_s17 = smov 0   ;;  %s788_s18 = smov 0  }
   0x6 LB: > { %s803_s19 = sadd.s32 4294967295, %s747_s18   ;;  %s498_s20 = sadd.s32 4294967294, %s747_s18   ;;  %s747_s18 = sphi %s788_s18, %s1042_s18   ;;  %s743_s17 = sphi %s786_s17, %s1041_s17   ;;  %s739_s16 = sphi %s784_s16, %s1040_s16   ;;  %s735_s15 = sphi %s782_s15, %s1039_s15  }
   0x7   : > { %s807_s21 = sadd.s32 1, %s747_s18   ;;  %s50_s22 = sadd.s32 1, %s743_s17 }
   0x8   : > { %s47_s23 = ssub.s32 %s747_s18, %s807_s21  ;;  %p57_p0 = scmp.ne.s32.totalorder %s743_s17, %s739_s16 }
   0x9   : > { %p48_p1 = scmp.eq.s32.totalorder %s47_s23, 0  ;;  %p58_p2 = scmp.eq.s32.totalorder %s747_s18, 0 }
   0xa   : > { %p63_p3 = scmp.ne.s32.totalorder %s739_s16, %s735_s15  ;;  %p1017_p4 = scmp.eq.s32.totalorder %s803_s19, 0 }
   0xb   : > { %s819_s24 = scalar_select %p48_p1, %s743_s17, %s50_s22  }
   0xc   : > { %p821_p5 = por %p58_p2, %p57_p0  ;;  %p827_p6 = por %p1017_p4, %p63_p3 }
   0xd   : > { %p87_p7 = scmp.eq.s32.totalorder %s803_s19, 1  ;;  %p93_p8 = scmp.eq.s32.totalorder %s498_s20, 1 }
   0xe   : > { %s1023_s26 = scalar_select %p827_p6, 1, 0 }
   0xf   : > { %p499_p9 = scmp.ge.s32.totalorder %s747_s18, 1  ;;  %p142_p10 = scmp.lt.s32.totalorder %s747_s18, 3 }
  0x10   : > { %p834_p11 = por %p87_p7, %p57_p0  ;;  %p838_p12 = por %p93_p8, %p63_p3 }
  0x11   : > { %p842_p13 = pnand %p499_p9, %p142_p10  ;;  %s749_s30 = smov [#allocation2]  }
  0x12   : > { %s1024_s27 = scalar_select %p834_p11, 1, 0 }
  0x13   : > { %s1025_s28 = scalar_select %p838_p12, 1, 0 }
  0x14   : > { %s1026_s29 = scalar_select %p842_p13, 1, 0 }
  0x15   : > { %p541_p4 = pneg %p842_p13  ;;  %s155_s5 = sshll.u32 %s749_s30, 4  ;;  %s156_s5 = int_to_ptr.vmem [resolvable:$true] %s155_s5 }
  0x16   : > { %p554_p0 = scmp.lt.s32.totalorder %s747_s18, 2  ;;  %p1027_p7 = scmp.eq.s32.totalorder %s803_s19, 0 }
  0x17   : > { %s166_s7 = sand.u32 1, %s743_s17   ;;  %s619_s12 = scalar_lea.hbm %s1012_s0, 64 }
  0x18   : > { %p853_p6 = pnand %p541_p4, %p1027_p7  ;;  %p860_p3 = pnand %p554_p0, %p821_p5 }
  0x19   : > { %s502_s9 = sshll.u32 %s166_s7, 7  ;;  %p620_p8 = scmp.ne.s32.totalorder %s1012_s0, %s619_s12 }
  0x1a   : > { %s1029_s8 = scalar_select %p860_p3, 1, 0 }
  0x1b   : > { %p621_p4 = pneg %p853_p6  ;;  %p626_p5 = scmp.lt.u32.totalorder %s619_s12, %s1012_s0 }
  0x1d   : > { %p622_p9 = pnand %p621_p4, %p620_p8 }
  0x1f   : > { %p623_p10 = pneg %p622_p9 }
  0x21   : > { %p628_p0 = pnand %p626_p5, %p623_p10 }
  0x23   : > { %631 = shalt.err (!%p628_p0)
}
  0x24   : > { %s632_s23 = scalar_lea.vmem %s156_s5, 64  ;;  %p640_p12 = scmp.lt.s32.totalorder %s156_s5, %s156_s5 }
  0x25   : > { %p633_p7 = scmp.ne.s32.totalorder %s156_s5, %s632_s23  ;;  %p641_p11 = scmp.lt.s32.totalorder %s632_s23, %s632_s23 }
  0x27   : > { %p635_p2 = pnand %p633_p7, %p621_p4  ;;  %p642_p13 = por %p641_p11, %p640_p12 }
  0x29   : > { %p636_p1 = pneg %p635_p2 }
  0x2b   : > { %p643_p3 = pnand %p642_p13, %p636_p1 }
  0x2d   : > { %646 = shalt.err (!%p643_p3)
}
  0x2e   : > { %544 = dma.hbm_to_vmem [thread:$0]  (!%p853_p6), %s1012_s0, 64, %s156_s5, [#allocation3]  }
  0x2f   : > { %s531_s10 = sshll.u32 %s747_s18, 7  ;;  %s170_s11 = scalar_lea.vmem [#allocation5], %s502_s9 }
  0x30   : > { %s177_s12 = sshll.u32 %s170_s11, 4  ;;  %s884_s20 = scalar_lea.hbm %s1013_s1, %s531_s10  ;;  %s886_s12 = int_to_ptr.vmem [resolvable:$true] %s177_s12 }
  0x31   : > { %s888_s6 = scalar_lea.sflag [#allocation6], %s166_s7  ;;  %s647_s22 = scalar_lea.hbm %s884_s20, 2048 }
  0x32   : > { %p648_p11 = scmp.ne.s32.totalorder %s884_s20, %s647_s22  ;;  %p1030_p12 = scmp.ne.s32.totalorder %s1029_s8, 0 }
  0x33   : > { %s652_s23 = scalar_lea.hbm %s1013_s1, 4096  ;;  %p653_p2 = scmp.lt.u32.totalorder %s884_s20, %s1013_s1 }
  0x34   : > { %p649_p6 = pneg %p1030_p12  ;;  %p654_p3 = scmp.lt.u32.totalorder %s652_s23, %s647_s22 }
  0x35   : > { %p656_p4 = scmp.lt.u32.totalorder %s647_s22, %s884_s20 }
  0x36   : > { %p650_p13 = pnand %p649_p6, %p648_p11  ;;  %p655_p8 = por %p654_p3, %p653_p2 }
  0x38   : > { %p651_p1 = pneg %p650_p13  ;;  %p657_p9 = por %p656_p4, %p655_p8 }
  0x3a   : > { %p658_p10 = pnand %p657_p9, %p651_p1 }
  0x3c   : > { %661 = shalt.err (!%p658_p10)
}
  0x3d   : > { %s662_s7 = scalar_lea.vmem %s886_s12, 2048  ;;  %s750_s10 = smov [#allocation5]  }
  0x3e   : > { %p663_p5 = scmp.ne.s32.totalorder %s886_s12, %s662_s7  ;;  %s667_s11 = sshll.u32 %s750_s10, 4  ;;  %s668_s11 = int_to_ptr.vmem [resolvable:$false] %s667_s11 }
  0x3f   : > { %s669_s13 = scalar_lea.vmem %s668_s11, 4096  ;;  %p670_p11 = scmp.lt.s32.totalorder %s886_s12, %s668_s11 }
  0x40   : > { %p665_p0 = pnand %p663_p5, %p649_p6  ;;  %p671_p13 = scmp.lt.s32.totalorder %s669_s13, %s662_s7 }
  0x42   : > { %p666_p7 = pneg %p665_p0  ;;  %p672_p2 = por %p671_p13, %p670_p11 }
  0x44   : > { %p673_p3 = pnand %p672_p2, %p666_p7 }
  0x46   : > { %676 = shalt.err (!%p673_p3)
}
  0x47   : > { %s751_s14 = smov 256   ;;  %s752_s22 = smov 128  }
  0x48   : > { %s753_s5 = smov 8   ;;  %p1031_p6 = scmp.ne.s32.totalorder %s1026_s29, 0 }
  0x49   : > { %548 = dma.hbm_to_vmem [thread:$0]  (!%p1030_p12), %s884_s20, 2048, %s886_s12, %s888_s6, %s751_s14, %s752_s22, %s753_s5  }
  0x4a   : > { %189 = sbr.rel (%p1031_p6) target bundleno = 485 (0x1e5), region = 28  ;;  %p1032_p1 = scmp.eq.s32.totalorder (!%p1031_p6), %s803_s19, 0 }
  0x51   : > { %722 = dma.done.wait (%p1032_p1), [#allocation3], 64   ;;  %p1033_p8 = pmov %p1032_p1 }
  0x52   : > { %s923_s9 = sand.u32 1, %s739_s16   ;;  %p1034_p12 = scmp.ne.s32.totalorder %s1023_s26, 0 }
  0x53   : > { %724 = vsyncadd (%p1033_p8), [#allocation3], 4294967232  ;;  %s507_s23 = sshll.u32 %s923_s9, 7  ;;  %s196_s25 = scalar_lea.sflag [#allocation6], %s923_s9 }
  0x54   : > { %s927_s30 = scalar_lea.vmem [#allocation5], %s507_s23 }
  0x55   : > { %726 = dma.done.wait (%p1034_p12), %s196_s25, 2048  }
  0x56   : > { %728 = vsyncadd (%p1034_p12), %s196_s25, 4294965248  ;;  %v754_v0 = vmov 0   ;;  %v595_v1 = vld [vmem:[%s927_s30 + $0x4] ss:$8 sps:$4 sm:$0xff]   ;;  %v597_v2 = vld [vmem:[%s927_s30] ss:$8 sps:$4 sm:$0xff]  }
  0x57   : > { %356 = vmatprep.mubr.bf16.mxu0 %v754_v0  ;;  %324 = vmatprep.subr.bf16.mxu0 %v595_v1  ;;  %v598_v3 = vld [vmem:[%s927_s30 + $0x14] ss:$8 sps:$4 sm:$0xff]   ;;  %v600_v4 = vld [vmem:[%s927_s30 + $0x10] ss:$8 sps:$4 sm:$0xff]   ;;  %v601_v5 = vld [vmem:[%s927_s30 + $0x24] ss:$8 sps:$4 sm:$0xff]  }
  0x58   : > { %325 = vmatpush1.bf16.msra.mxu0 %v597_v2  ;;  %v603_v6 = vld [vmem:[%s927_s30 + $0x20] ss:$8 sps:$4 sm:$0xff]   ;;  %v604_v7 = vld [vmem:[%s927_s30 + $0x34] ss:$8 sps:$4 sm:$0xff]   ;;  %v606_v8 = vld [vmem:[%s927_s30 + $0x30] ss:$8 sps:$4 sm:$0xff]  }
  0x59   : > { %326 = vmatprep.subr.bf16.mxu0 %v598_v3  ;;  %v607_v9 = vld [vmem:[%s927_s30 + $0x44] ss:$8 sps:$4 sm:$0xff]   ;;  %v609_v10 = vld [vmem:[%s927_s30 + $0x40] ss:$8 sps:$4 sm:$0xff]   ;;  %v610_v11 = vld [vmem:[%s927_s30 + $0x54] ss:$8 sps:$4 sm:$0xff]  }
  0x5a   : > { %v612_v12 = vld [vmem:[%s927_s30 + $0x50] ss:$8 sps:$4 sm:$0xff]   ;;  %v613_v13 = vld [vmem:[%s927_s30 + $0x64] ss:$8 sps:$4 sm:$0xff]   ;;  %v615_v14 = vld [vmem:[%s927_s30 + $0x60] ss:$8 sps:$4 sm:$0xff]  }
  0x5b   : > { %v616_v15 = vld [vmem:[%s927_s30 + $0x74] ss:$8 sps:$4 sm:$0xff]   ;;  %v618_v16 = vld [vmem:[%s927_s30 + $0x70] ss:$8 sps:$4 sm:$0xff]   ;;  %s508_s26 = sshll.u32 %s923_s9, 4  ;;  %p1035_p4 = scmp.ne.s32.totalorder %s803_s19, 0 }
  0x5c   : > { %327 = vmatpush1.bf16.msra.mxu0 %v600_v4  ;;  %v227_v17 = vld [vmem:[#allocation2] sm:$0xf]  ;;  %s219_s29 = scalar_lea.vmem [#allocation7], %s508_s26  ;;  %vm371_vm0 = vcmask (!%p1035_p4), 7168   ;;  %v755_v22 = vmov (!%p1035_p4), 0.0  }
  0x5d   : > { %328 = vmatprep.subr.bf16.mxu0 %v601_v5  ;;  %372 = vst.msk [vmem:[%s1015_s3] sm:$0xff] (!%p1035_p4), %vm371_vm0, %v755_v22  ;;  %373 = vst.msk [vmem:[%s1016_s4] sm:$0xff] (!%p1035_p4), %vm371_vm0, %v755_v22 }
  0x60   : > { %329 = vmatpush1.bf16.msra.mxu0 %v603_v6 }
  0x61   : > { %330 = vmatprep.subr.bf16.mxu0 %v604_v7 }
  0x64   : > { %331 = vmatpush1.bf16.msra.mxu0 %v606_v8 }
  0x65   : > { %332 = vmatprep.subr.bf16.mxu0 %v607_v9 }
  0x68   : > { %333 = vmatpush1.bf16.msra.mxu0 %v609_v10 }
  0x69   : > { %334 = vmatprep.subr.bf16.mxu0 %v610_v11 }
  0x6c   : > { %335 = vmatpush1.bf16.msra.mxu0 %v612_v12 }
  0x6d   : > { %336 = vmatprep.subr.bf16.mxu0 %v613_v13 }
  0x70   : > { %337 = vmatpush1.bf16.msra.mxu0 %v615_v14 }
  0x71   : > { %338 = vmatprep.subr.bf16.mxu0 %v616_v15 }
  0x74   : > { %339 = vmatpush1.bf16.msra.mxu0 %v618_v16 }
  0x77   : > { %357 = vmatmul.mubr.bf16.vlgmr.msra.gmra.mrb[0].mxu0 %v227_v17 }
 0x147   : > { %370 = sbr.rel (%p1035_p4) target bundleno = 334 (0x14e), region = 40 }
 0x14a   : > { %v358_v18 = vpop.f32.mrb[0].mxu0 }
 0x14b   : > { %365 = vst [vmem:[%s219_s29] sm:$0xff] %v358_v18  ;;  %v360_v19 = vpop.f32.mrb[1].mxu0 }
 0x14c   : > { %366 = vst [vmem:[%s219_s29 + $0x8] sm:$0xff] %v360_v19  ;;  %v362_v20 = vpop.f32.mrb[2].mxu0 }
 0x14d   : > { %v363_v21 = vpop.f32.mrb[3].mxu0 }
 0x14e PF: > { %v375_v23 = vadd.f32 %v360_v19, %v358_v18  ;;  %v382_v24 = vmul.f32 %v358_v18, %v358_v18  ;;  %v383_v25 = vmul.f32 %v360_v19, %v360_v19  ;;  %s532_s7 = sshll.u32 %s803_s19, 8  ;;  %s404_s10 = sshll.u32 %s219_s29, 4  ;;  %s405_s10 = int_to_ptr.vmem [resolvable:$true] %s404_s10 }
 0x14f   : > { %s962_s14 = scalar_lea.hbm %s1014_s2, %s532_s7  ;;  %s390_s22 = scalar_lea.sflag [#allocation4], %s923_s9 }
 0x150   : > { %376 = vadd.xlane.f32.xlu0 %v375_v23  ;;  %v384_v26 = vadd.f32 %v383_v25, %v382_v24  ;;  %s677_s5 = scalar_lea.vmem %s405_s10, 256  ;;  %p1036_p10 = scmp.ne.s32.totalorder %s1024_s27, 0 }
 0x151   : > { %p678_p9 = scmp.ne.s32.totalorder %s405_s10, %s677_s5  ;;  %s756_s23 = smov [#allocation7]  }
 0x152   : > { %s681_s25 = sshll.u32 %s756_s23, 4  ;;  %s682_s25 = int_to_ptr.vmem [resolvable:$false] %s681_s25 }
 0x153   : > { %p679_p5 = pnand %p678_p9, %p1036_p10  ;;  %s683_s30 = scalar_lea.vmem %s682_s25, 512 }
 0x154   : > { %385 = vadd.xlane.f32.xlu0 %v384_v26  ;;  %p684_p7 = scmp.lt.s32.totalorder %s405_s10, %s682_s25  ;;  %p685_p11 = scmp.lt.s32.totalorder %s683_s30, %s677_s5 }
 0x155   : > { %p680_p0 = pneg %p679_p5 }
 0x156   : > { %p686_p13 = por %p685_p11, %p684_p7 }
 0x158   : > { %p687_p2 = pnand %p686_p13, %p680_p0 }
 0x15a   : > { %690 = shalt.err (!%p687_p2)
}
 0x15b   : > { %s691_s19 = scalar_lea.hbm %s962_s14, 256  ;;  %s695_s29 = scalar_lea.hbm %s1014_s2, 512 }
 0x15c   : > { %p692_p3 = scmp.ne.s32.totalorder %s962_s14, %s691_s19  ;;  %p696_p8 = scmp.lt.u32.totalorder %s962_s14, %s1014_s2 }
 0x15d   : > { %p697_p12 = scmp.lt.u32.totalorder %s695_s29, %s691_s19  ;;  %p699_p9 = scmp.lt.u32.totalorder %s691_s19, %s962_s14 }
 0x15e   : > { %p693_p6 = pnand %p692_p3, %p1036_p10 }
 0x15f   : > { %p698_p4 = por %p697_p12, %p696_p8 }
 0x160   : > { %p694_p1 = pneg %p693_p6 }
 0x161   : > { %p700_p5 = por %p699_p9, %p698_p4 }
 0x163   : > { %p701_p0 = pnand %p700_p5, %p694_p1 }
 0x165   : > { %704 = shalt.err (!%p701_p0)
}
 0x166   : > { %539 = dma.vmem_to_hbm [thread:$0]  (%p1036_p10), %s405_s10, 256, %s962_s14, %s390_s22   ;;  %v374_v27 = vld [vmem:[%s1015_s3] sm:$0xff]  ;;  %vm379_vm1 = vcmask 7168  }
 0x167   : > { %v381_v30 = vld [vmem:[%s1016_s4] sm:$0xff] }
 0x1dd   : > { %v377_v28 = vpop.xlane.xlu0 %376 }
 0x1de   : > { %v378_v29 = vadd.f32 %v377_v28, %v374_v27 }
 0x1e0   : > { %380 = vst.msk [vmem:[%s1015_s3] sm:$0xff] %vm379_vm1, %v378_v29 }
 0x1e1   : > { %v386_v31 = vpop.xlane.xlu0 %385 }
 0x1e2   : > { %v387_v32 = vadd.f32 %v386_v31, %v381_v30 }
 0x1e4   : > { %388 = vst.msk [vmem:[%s1016_s4] sm:$0xff] %vm379_vm1, %v387_v32 }
 0x1e5 PF: > { %s428_s10 = sand.u32 1, %s735_s15   ;;  %p1037_p10 = scmp.ne.s32.totalorder %s1025_s28, 0 }
 0x1e6   : > { %p1038_p7 = scmp.ge.s32.totalorder %s747_s18, 2  ;;  %s429_s14 = scalar_lea.sflag [#allocation4], %s428_s10 }
 0x1e8   : > { %p550_p11 = pnand %p1038_p7, %p1037_p10 }
 0x1ea   : > { %730 = dma.done.wait (!%p550_p11), %s429_s14, 256  }
 0x1eb   : > { %732 = vsyncadd (!%p550_p11), %s429_s14, 4294967040  ;;  %p19_p13 = scmp.ge.s32.totalorder %s807_s21, 4   ;;  %s1039_s15 = smov %s739_s16 }
 0x1ec   : > { %s1040_s16 = smov %s743_s17  ;;  %s1041_s17 = smov %s819_s24 }
 0x1ed   : > { %s1042_s18 = smov %s807_s21  ;;  %21 = sbr.rel (!%p19_p13) target bundleno = 6 (0x6), region = 98 }
 0x1f4   :  { %434 = vsyncpa [#allocation3], 1 }
 0x1f5   :  { %436 = vsyncpa [#allocation3 + $0x1], 1 }
 0x1f6   :  { %437 = vsyncpa [#allocation6], 1 }
 0x1f7   :  { %439 = vsyncpa [#allocation6 + $0x1], 1 }
 0x1f8   :  { %440 = vsyncpa [#allocation4], 1 }
 0x1f9   :  { %442 = vsyncpa [#allocation4 + $0x1], 1 }

</bundles_post_ra>
